<compile_context>
chip_gen: v5e
topology: v5e:2x2
jax: 0.10.0
libtpu: 0.0.40
codegen_flags: <defaults>
</compile_context>

<pallas_src>
import functools

import jax
import jax.numpy as jnp
from jax.experimental import pallas as pl
from jax.experimental.pallas import tpu as pltpu


def _round_up(x, m):
    return ((x + m - 1) // m) * m


# ----------------------------- Pallas kernel -------------------------------

def _mlp_fused_kernel(*refs, acts, douts):
    """Fully fused MLP.

    refs = (x, shifts, w0, w1, ..., w_{n-1}, out)
      x      : (tb, in_p)              f32
      shifts : (n_layers, max_dout_p)  f32   (bias + BN folded, packed rows)
      w_i    : (din_p, dout_p)         bf16  (BN folded)
      out    : (tb, out_p)             f32
    Per layer: h = act(h_bf16 @ W_bf16 + s_f32), f32 accumulation on the MXU.
    """
    x_ref = refs[0]
    s_ref = refs[1]
    w_refs = refs[2:-1]
    o_ref = refs[-1]

    s_all = s_ref[...]                          # (n_layers, max_dout_p) f32
    h = x_ref[...].astype(jnp.bfloat16)         # bf16 inputs -> native MXU path
    for li, act in enumerate(acts):
        w = w_refs[li][...]                                      # bf16
        y = jnp.dot(h, w, preferred_element_type=jnp.float32)    # f32 acc
        y = y + s_all[li:li + 1, :douts[li]]                     # f32 shift
        if act == "tanh":
            h = jnp.tanh(y).astype(jnp.bfloat16)                 # EUP (f32 math)
        elif act == "relu":
            h = jnp.maximum(y, 0.0).astype(jnp.bfloat16)         # VPU (f32 math)
        else:                         # final Linear: no BN / activation
            h = y                     # keep f32 for the store
    o_ref[...] = h.astype(o_ref.dtype)


def mlp_forward(x, kparams):
    """Run the fused MLP kernel.

    x:        (B, input_size) float32
    kparams:  dict from fold_and_pad_params(): padded/folded bf16 weights +
              packed f32 shifts.
    Returns:  (B, output_size) float32
    """
    B, in_features = x.shape
    dims = kparams["dims_padded"]          # [In_p, H1_p, ..., Out_p], all %128==0
    acts = kparams["acts"]
    ws = kparams["ws"]                     # list of bf16 (din_p, dout_p)
    shifts = kparams["shifts"]             # (n_layers, max_dout_p) f32
    out_size = kparams["output_size"]
    n_layers = len(acts)

    # ----- batch-tile selection (VMEM-budget driven) -----
    w_bytes = sum(int(w.size) * 2 for w in ws)     # bf16, single-buffered
    s_bytes = int(shifts.size) * 4
    widest = max(dims)

    def act_bytes(tb):
        # f32 input/output tiles are double-buffered by the pipeline; the
        # widest intermediate lives in VMEM/vregs during compute.
        return 4 * tb * (2 * dims[0] + 2 * dims[-1] + 2 * widest)

    budget = 48 << 20                      # conservative: fits v5e/v6e/v7x
    B8 = _round_up(B, 8)
    if B8 <= 512:
        tb = B8                            # single block for small batches
    else:
        tb = 512                           # big tiles amortize per-step overhead
        while tb > 128 and w_bytes + s_bytes + act_bytes(tb) > budget:
            tb //= 2
        B8 = _round_up(B, tb)
    # TODO(synk): if the bf16 weights alone exceed the VMEM budget (huge hidden
    # dims on v7x's 64 MiB), stream the largest layer's weight over N-tiles with
    # an inner pltpu.emit_pipeline instead of keeping it fully resident.

    # ----- pad input only when actually needed (aligned case: zero-copy) -----
    if B8 == B and dims[0] == in_features:
        x_in = x
    else:
        x_in = jnp.zeros((B8, dims[0]), x.dtype).at[:B, :in_features].set(x)

    # ----- specs -----
    def resident_spec(shape):
        idx = lambda i: (0, 0)
        if hasattr(pl, "Buffered"):
            try:    # grid-invariant block: single-buffer it (halves VMEM cost)
                return pl.BlockSpec(shape, idx, pipeline_mode=pl.Buffered(1))
            except TypeError:
                pass
        return pl.BlockSpec(shape, idx)

    in_specs = [pl.BlockSpec((tb, dims[0]), lambda i: (i, 0)),
                resident_spec(shifts.shape)]
    inputs = [x_in, shifts]
    for li in range(n_layers):
        in_specs.append(resident_spec((dims[li], dims[li + 1])))
        inputs.append(ws[li])
    out_spec = pl.BlockSpec((tb, dims[-1]), lambda i: (i, 0))

    est = w_bytes + s_bytes + act_bytes(tb) + (4 << 20)   # + scratch margin
    vmem_limit = int(min(max(2 * est, 32 << 20), 56 << 20))

    flops = 2 * sum(B8 * dims[i] * dims[i + 1] for i in range(n_layers))
    transcendentals = B8 * dims[1]          # tanh on the first hidden layer
    bytes_accessed = (4 * int(x_in.size)
                      + 2 * sum(int(w.size) for w in ws)
                      + 4 * int(shifts.size)
                      + 4 * B8 * dims[-1])

    out = pl.pallas_call(
        functools.partial(_mlp_fused_kernel, acts=tuple(acts),
                          douts=tuple(dims[1:])),
        out_shape=jax.ShapeDtypeStruct((B8, dims[-1]), jnp.float32),
        grid=(B8 // tb,),
        in_specs=in_specs,
        out_specs=out_spec,
        compiler_params=pltpu.CompilerParams(
            # batch-tile axis is independent -> shards across TCs on v7x,
            # harmless no-op on v5e/v6e.
            dimension_semantics=("parallel",),
            vmem_limit_bytes=vmem_limit),
        cost_estimate=pl.CostEstimate(
            flops=flops,
            transcendentals=transcendentals,
            bytes_accessed=bytes_accessed),
    )(*inputs)
    return out[:B, :out_size]


# ------------------------- Parameter construction --------------------------

def init_mlp_params(key, input_size, hidden_sizes, output_size,
                    use_batchnorm=True):
    """Deterministic synthetic parameters mirroring the PyTorch module shapes.

    Returns raw (unfolded, unpadded, f32) per-layer params for the reference.
    """
    sizes = [input_size] + list(hidden_sizes) + [output_size]
    params = []
    n_layers = len(sizes) - 1
    keys = jax.random.split(key, n_layers * 6)
    eps = 1e-5
    for li in range(n_layers):
        fan_in, fan_out = sizes[li], sizes[li + 1]
        kw, kb, kg, kbeta, kmean, kvar = keys[6 * li: 6 * li + 6]
        bound = 1.0 / jnp.sqrt(fan_in)
        w = jax.random.uniform(kw, (fan_in, fan_out), jnp.float32, -bound, bound)
        b = jax.random.uniform(kb, (1, fan_out), jnp.float32, -bound, bound)

        is_last = (li == n_layers - 1)
        if use_batchnorm and not is_last:
            gamma = 1.0 + 0.1 * jax.random.normal(kg, (1, fan_out), jnp.float32)
            beta = 0.1 * jax.random.normal(kbeta, (1, fan_out), jnp.float32)
            running_mean = 0.05 * jax.random.normal(kmean, (1, fan_out), jnp.float32)
            running_var = jnp.abs(
                1.0 + 0.1 * jax.random.normal(kvar, (1, fan_out), jnp.float32))
            scale = gamma / jnp.sqrt(running_var + eps)
            shift = beta - running_mean * scale
        else:
            scale = jnp.ones((1, fan_out), jnp.float32)
            shift = jnp.zeros((1, fan_out), jnp.float32)

        if is_last:
            act = "none"
        elif li == 0:
            act = "tanh"
        else:
            act = "relu"
        params.append(dict(w=w, b=b, scale=scale, shift=shift, act=act))
    return params


def fold_and_pad_params(raw_params, input_size, output_size):
    """Fold bias + eval-mode BN into the weights, zero-pad feature dims to
    multiples of 128, cast weights to bf16, and pack all shifts into a single
    (n_layers, max_dout_p) f32 block (one DMA instead of n tiny ones)."""
    dims = [input_size] + [int(p["w"].shape[1]) for p in raw_params]
    dims_padded = [_round_up(d, 128) for d in dims]
    n_layers = len(raw_params)
    max_dout_p = max(dims_padded[1:])

    ws, acts = [], []
    shifts = jnp.zeros((n_layers, max_dout_p), jnp.float32)
    for li, p in enumerate(raw_params):
        din, dout = p["w"].shape
        w_f = p["w"] * p["scale"]                          # (din, dout) * (1, dout)
        s_f = (p["b"] * p["scale"] + p["shift"]).reshape(-1)
        din_p, dout_p = dims_padded[li], dims_padded[li + 1]
        w_pad = jnp.zeros((din_p, dout_p), jnp.float32).at[:din, :dout].set(w_f)
        ws.append(w_pad.astype(jnp.bfloat16))   # bf16: native MXU, half the DMA
        shifts = shifts.at[li, :dout].set(s_f)  # f32 shift added post-accumulate
        acts.append(p["act"])
    return dict(ws=ws, shifts=shifts, acts=acts, dims_padded=dims_padded,
                output_size=output_size)


# -------------------------------- Reference --------------------------------

def mlp_reference(x, raw_params):
    """Pure-JAX f32 reference using the original (unfolded, unpadded) params."""
    # TODO(synk): training-mode BatchNorm1d (batch statistics) and Dropout(0.5)
    # randomness are not reproduced; eval-mode semantics are implemented.
    h = x
    for p in raw_params:
        y = h @ p["w"] + p["b"]
        y = y * p["scale"] + p["shift"]
        if p["act"] == "tanh":
            y = jnp.tanh(y)
        elif p["act"] == "relu":
            y = jnp.maximum(y, 0.0)
        h = y
    return h


# ---------------------------------- Main ------------------------------------

if __name__ == "__main__":
    key = jax.random.PRNGKey(0)
    k_x, k_p = jax.random.split(key)

    batch = 8
    input_size = 16
    hidden_sizes = [32, 32]
    output_size = 4

    x = jax.random.normal(k_x, (batch, input_size), jnp.float32)
    raw_params = init_mlp_params(k_p, input_size, hidden_sizes, output_size,
                                 use_batchnorm=True)
    kparams = fold_and_pad_params(raw_params, input_size, output_size)

    out = mlp_forward(x, kparams)
    out = jax.block_until_ready(out)

    ref = mlp_reference(x, raw_params)
    assert out.shape == (batch, output_size), out.shape
    # bf16 matmul inputs -> loosened tolerance vs the f32 reference.
    assert jnp.allclose(out, ref, atol=5e-2, rtol=5e-2), \
        f"max err {jnp.max(jnp.abs(out - ref))}"

    print("KERNEL_OK")
</pallas_src>

<mosaic_0001>
module attributes {stable_mosaic.version = 11 : i64} {
  func.func @_mlp_fused_kernel(%arg0: i32, %arg1: memref<8x128xf32, #tpu.memory_space<vmem>>, %arg2: memref<3x128xf32, #tpu.memory_space<vmem>>, %arg3: memref<128x128xbf16, #tpu.memory_space<vmem>>, %arg4: memref<128x128xbf16, #tpu.memory_space<vmem>>, %arg5: memref<128x128xbf16, #tpu.memory_space<vmem>>, %arg6: memref<8x128xf32, #tpu.memory_space<vmem>>) attributes {dimension_semantics = [#tpu.dimension_semantics<parallel>], iteration_bounds = array<i64: 1>, scalar_prefetch = 0 : i64, scratch_operands = 0 : i64, tpu.core_type = #tpu.core_type<tc>, window_params = [{transform_indices = @transform_0, window_bounds = array<i64: 8, 128>}, {pipeline_mode = #tpu.pipeline_mode<synchronous>, transform_indices = @transform_1, window_bounds = array<i64: 3, 128>}, {pipeline_mode = #tpu.pipeline_mode<synchronous>, transform_indices = @transform_2, window_bounds = array<i64: 128, 128>}, {pipeline_mode = #tpu.pipeline_mode<synchronous>, transform_indices = @transform_3, window_bounds = array<i64: 128, 128>}, {pipeline_mode = #tpu.pipeline_mode<synchronous>, transform_indices = @transform_4, window_bounds = array<i64: 128, 128>}, {transform_indices = @transform_5, window_bounds = array<i64: 8, 128>}]} {
    %c0 = arith.constant 0 : index
    %c0_0 = arith.constant 0 : index
    %0 = vector.load %arg2[%c0, %c0_0] : memref<3x128xf32, #tpu.memory_space<vmem>>, vector<3x128xf32>
    %c0_1 = arith.constant 0 : index
    %c0_2 = arith.constant 0 : index
    %1 = vector.load %arg1[%c0_1, %c0_2] : memref<8x128xf32, #tpu.memory_space<vmem>>, vector<8x128xf32>
    %2 = arith.truncf %1 : vector<8x128xf32> to vector<8x128xbf16>
    %c0_3 = arith.constant 0 : index
    %c0_4 = arith.constant 0 : index
    %3 = vector.load %arg3[%c0_3, %c0_4] : memref<128x128xbf16, #tpu.memory_space<vmem>>, vector<128x128xbf16>
    %cst = arith.constant dense<0.000000e+00> : vector<8x128xf32>
    %4 = tpu.matmul %2, %3, %cst {dimension_numbers = #tpu.dot_dimension_numbers<[1], [0], [0], [1], [0, 0, 1, 1], [], []>} : vector<8x128xbf16>, vector<128x128xbf16>, vector<8x128xf32> -> vector<8x128xf32>
    %5 = vector.extract_strided_slice %0 {offsets = [0, 0], sizes = [1, 128], strides = [1, 1]} : vector<3x128xf32> to vector<1x128xf32>
    %6 = vector.broadcast %5 : vector<1x128xf32> to vector<8x128xf32>
    %7 = arith.addf %4, %6 : vector<8x128xf32>
    %8 = math.tanh %7 : vector<8x128xf32>
    %9 = arith.truncf %8 : vector<8x128xf32> to vector<8x128xbf16>
    %c0_5 = arith.constant 0 : index
    %c0_6 = arith.constant 0 : index
    %10 = vector.load %arg4[%c0_5, %c0_6] : memref<128x128xbf16, #tpu.memory_space<vmem>>, vector<128x128xbf16>
    %cst_7 = arith.constant dense<0.000000e+00> : vector<8x128xf32>
    %11 = tpu.matmul %9, %10, %cst_7 {dimension_numbers = #tpu.dot_dimension_numbers<[1], [0], [0], [1], [0, 0, 1, 1], [], []>} : vector<8x128xbf16>, vector<128x128xbf16>, vector<8x128xf32> -> vector<8x128xf32>
    %12 = vector.extract_strided_slice %0 {offsets = [1, 0], sizes = [1, 128], strides = [1, 1]} : vector<3x128xf32> to vector<1x128xf32>
    %13 = vector.broadcast %12 : vector<1x128xf32> to vector<8x128xf32>
    %14 = arith.addf %11, %13 : vector<8x128xf32>
    %cst_8 = arith.constant 0.000000e+00 : f32
    %15 = vector.broadcast %cst_8 : f32 to vector<8x128xf32>
    %16 = arith.maximumf %14, %15 : vector<8x128xf32>
    %17 = arith.truncf %16 : vector<8x128xf32> to vector<8x128xbf16>
    %c0_9 = arith.constant 0 : index
    %c0_10 = arith.constant 0 : index
    %18 = vector.load %arg5[%c0_9, %c0_10] : memref<128x128xbf16, #tpu.memory_space<vmem>>, vector<128x128xbf16>
    %cst_11 = arith.constant dense<0.000000e+00> : vector<8x128xf32>
    %19 = tpu.matmul %17, %18, %cst_11 {dimension_numbers = #tpu.dot_dimension_numbers<[1], [0], [0], [1], [0, 0, 1, 1], [], []>} : vector<8x128xbf16>, vector<128x128xbf16>, vector<8x128xf32> -> vector<8x128xf32>
    %20 = vector.extract_strided_slice %0 {offsets = [2, 0], sizes = [1, 128], strides = [1, 1]} : vector<3x128xf32> to vector<1x128xf32>
    %21 = vector.broadcast %20 : vector<1x128xf32> to vector<8x128xf32>
    %22 = arith.addf %19, %21 : vector<8x128xf32>
    %c0_12 = arith.constant 0 : index
    %c0_13 = arith.constant 0 : index
    %23 = vector.load %arg6[%c0_12, %c0_13] : memref<8x128xf32, #tpu.memory_space<vmem>>, vector<8x128xf32>
    tpu.vector_store %arg6[%c0_12, %c0_13], %22 {strides = array<i32>} : memref<8x128xf32, #tpu.memory_space<vmem>>, vector<8x128xf32>,
    return
  }
  func.func @transform_0(%arg0: i32) -> (i32, i32) {
    %c0_i32 = arith.constant 0 : i32
    %c0_i32_0 = arith.constant 0 : i32
    return %arg0, %c0_i32 : i32, i32
  }
  func.func @transform_1(%arg0: i32) -> (i32, i32) {
    %c0_i32 = arith.constant 0 : i32
    %c0_i32_0 = arith.constant 0 : i32
    %c0_i32_1 = arith.constant 0 : i32
    return %c0_i32, %c0_i32_0 : i32, i32
  }
  func.func @transform_2(%arg0: i32) -> (i32, i32) {
    %c0_i32 = arith.constant 0 : i32
    %c0_i32_0 = arith.constant 0 : i32
    %c0_i32_1 = arith.constant 0 : i32
    return %c0_i32, %c0_i32_0 : i32, i32
  }
  func.func @transform_3(%arg0: i32) -> (i32, i32) {
    %c0_i32 = arith.constant 0 : i32
    %c0_i32_0 = arith.constant 0 : i32
    %c0_i32_1 = arith.constant 0 : i32
    return %c0_i32, %c0_i32_0 : i32, i32
  }
  func.func @transform_4(%arg0: i32) -> (i32, i32) {
    %c0_i32 = arith.constant 0 : i32
    %c0_i32_0 = arith.constant 0 : i32
    %c0_i32_1 = arith.constant 0 : i32
    return %c0_i32, %c0_i32_0 : i32, i32
  }
  func.func @transform_5(%arg0: i32) -> (i32, i32) {
    %c0_i32 = arith.constant 0 : i32
    %c0_i32_0 = arith.constant 0 : i32
    return %arg0, %c0_i32 : i32, i32
  }
}

</mosaic_0001>

<bundles_post_ra>
// kernel: tpu_custom_call.1
= control target key start
LH: loop header
LB: loop body
LE: loop exit
PB: predicated region body
PF: predicated region fallthrough
CT: control target
= control target key end

     0   :  { %10 = vsyncpa [#allocation3], 0  ;;  %s694_s0 = inlined_call_operand.hbm [shape: f32[8,128], index: 0, kind: input, shape index: {}]   ;;  %s695_s1 = inlined_call_operand.hbm [shape: f32[3,128], index: 1, kind: input, shape index: {}]   ;;  %s696_s2 = inlined_call_operand.hbm [shape: bf16[128,128], index: 2, kind: input, shape index: {}]   ;;  %s697_s3 = inlined_call_operand.hbm [shape: bf16[128,128], index: 3, kind: input, shape index: {}]   ;;  %s698_s4 = inlined_call_operand.hbm [shape: bf16[128,128], index: 4, kind: input, shape index: {}]   ;;  %s699_s5 = inlined_call_operand.hbm [shape: f32[8,128], index: 5, kind: output, shape index: {}]  }
   0x1   :  { %11 = vsyncpa [#allocation6], 0 }
   0x2   :  { %12 = vsyncpa [#allocation9], 0  ;;  %s30_s20 = sshll.u32 %s695_s1, 4  ;;  %s31_s20 = int_to_ptr.hbm [resolvable:$true] %s30_s20 }
   0x3   :  { %13 = vsyncpa [#allocation4], 0  ;;  %s638_s21 = smov [#allocation5]   ;;  %s53_s25 = sshll.u32 %s697_s3, 4  ;;  %s54_s25 = int_to_ptr.hbm [resolvable:$true] %s53_s25 }
   0x4   :  { %s32_s22 = sshll.u32 %s638_s21, 4  ;;  %s639_s26 = smov [#allocation8]   ;;  %s33_s22 = int_to_ptr.vmem [resolvable:$true] %s32_s22 }
   0x5   :  { %35 = dma.hbm_to_vmem [thread:$0]  %s31_s20, 64, %s33_s22, [#allocation6]  }
   0x6   :  { %s55_s27 = sshll.u32 %s639_s26, 4  ;;  %s19_s30 = sshll.u32 %s694_s0, 4  ;;  %s56_s27 = int_to_ptr.vmem [resolvable:$true] %s55_s27  ;;  %s20_s30 = int_to_ptr.hbm [resolvable:$true] %s19_s30 }
   0x7   :  { %s640_s1 = smov 64   ;;  %s641_s6 = smov 4  }
   0x8   :  { %61 = dma.hbm_to_vmem [thread:$0]  %s54_s25, 1024, %s56_s27, [#allocation9], %s640_s1, %s640_s1, %s641_s6  }
   0x9   :  { %s40_s9 = sshll.u32 %s696_s2, 4  ;;  %s642_s10 = smov [#allocation2]   ;;  %s41_s9 = int_to_ptr.hbm [resolvable:$true] %s40_s9 }
   0xa   :  { %s21_s11 = sshll.u32 %s642_s10, 4  ;;  %s643_s3 = smov [#allocation7]   ;;  %s22_s11 = int_to_ptr.vmem [resolvable:$true] %s21_s11 }
   0xb   :  { %24 = dma.hbm_to_vmem [thread:$0]  %s20_s30, 128, %s22_s11, [#allocation3]  }
   0xc   :  { %s42_s12 = sshll.u32 %s643_s3, 4  ;;  %s66_s0 = sshll.u32 %s698_s4, 4  ;;  %s43_s12 = int_to_ptr.vmem [resolvable:$true] %s42_s12  ;;  %s67_s0 = int_to_ptr.hbm [resolvable:$true] %s66_s0 }
   0xd   :  { %48 = dma.hbm_to_vmem [thread:$0]  %s41_s9, 1024, %s43_s12, [#allocation6], %s640_s1, %s640_s1, %s641_s6  }
   0xe   :  { %s644_s15 = smov [#allocation10]  }
   0xf   :  { %s68_s16 = sshll.u32 %s644_s15, 4  ;;  %s69_s16 = int_to_ptr.vmem [resolvable:$true] %s68_s16 }
  0x10   :  { %74 = dma.hbm_to_vmem [thread:$0]  %s67_s0, 1024, %s69_s16, [#allocation9], %s640_s1, %s640_s1, %s641_s6  }
  0x11   :  { %630 = dma.done.wait [#allocation3], 128  }
  0x12   :  { %631 = vsyncadd [#allocation3], 4294967168 }
  0x13   :  { %632 = dma.done.wait [#allocation6], 1088  }
  0x14   :  { %633 = vsyncadd [#allocation6], 4294966208 }
  0x15   :  { %634 = dma.done.wait [#allocation9], 2048  }
  0x16   :  { %635 = vsyncadd [#allocation9], 4294965248  ;;  %v459_v0 = vld [vmem:[#allocation7 + $0x38] sm:$0xff]  ;;  %v458_v1 = vld [vmem:[#allocation7 + $0x30] sm:$0xff]  ;;  %s645_s2 = smov [#allocation11]   ;;  %s344_s19 = sshll.u32 %s699_s5, 4  ;;  %s345_s19 = int_to_ptr.hbm [resolvable:$true] %s344_s19 }
  0x17   :  { %163 = vmatpush.bf16.msra.mxu0 %v459_v0  ;;  %v467_v2 = vld [vmem:[#allocation8 + $0x38] sm:$0xff]  ;;  %v466_v3 = vld [vmem:[#allocation8 + $0x30] sm:$0xff]  ;;  %v457_v4 = vld [vmem:[#allocation7 + $0x28] sm:$0xff]  ;;  %s342_s4 = sshll.u32 %s645_s2, 4  ;;  %s343_s4 = int_to_ptr.vmem [resolvable:$true] %s342_s4 }
  0x18   :  { %243 = vmatpush.bf16.msra.mxu1 %v467_v2  ;;  %v465_v5 = vld [vmem:[#allocation8 + $0x28] sm:$0xff]  ;;  %v456_v6 = vld [vmem:[#allocation7 + $0x20] sm:$0xff]  ;;  %v455_v8 = vld [vmem:[#allocation7 + $0x18] sm:$0xff] }
  0x19   :  { %v464_v7 = vld [vmem:[#allocation8 + $0x20] sm:$0xff]  ;;  %v463_v9 = vld [vmem:[#allocation8 + $0x18] sm:$0xff]  ;;  %v454_v10 = vld [vmem:[#allocation7 + $0x10] sm:$0xff] }
  0x1a   :  { %v453_v11 = vld [vmem:[#allocation7 + $0x8] sm:$0xff]  ;;  %v452_v12 = vld [vmem:[#allocation7] sm:$0xff]  ;;  %v96_v13 = vld [vmem:[#allocation2] sm:$0xff] }
  0x1b   :  { %164 = vmatpush.bf16.msra.mxu0 %v458_v1  ;;  %v97_v14 = vpack.c.bf16 %v96_v13, %v96_v13  ;;  %v462_v15 = vld [vmem:[#allocation8 + $0x10] sm:$0xff]  ;;  %v461_v16 = vld [vmem:[#allocation8 + $0x8] sm:$0xff]  ;;  %v460_v17 = vld [vmem:[#allocation8] sm:$0xff] }
  0x1c   :  { %244 = vmatpush.bf16.msra.mxu1 %v466_v3  ;;  %v475_v18 = vld [vmem:[#allocation10 + $0x38] sm:$0xff]  ;;  %v474_v19 = vld [vmem:[#allocation10 + $0x30] sm:$0xff]  ;;  %v473_v20 = vld [vmem:[#allocation10 + $0x28] sm:$0xff] }
  0x1d   :  { %323 = vmatpush.bf16.msra.mxu2 %v475_v18  ;;  %v472_v21 = vld [vmem:[#allocation10 + $0x20] sm:$0xff]  ;;  %v95_v22 = vld [vmem:[#allocation5] sm:$0x7]  ;;  %v470_v25 = vld [vmem:[#allocation10 + $0x10] sm:$0xff] }
  0x1e   :  { %v471_v23 = vld [vmem:[#allocation10 + $0x18] sm:$0xff]  ;;  %v114_v24 = vperm.slane %v95_v22, 0  ;;  %v469_v31 = vld [vmem:[#allocation10 + $0x8] sm:$0xff]  ;;  %v468_v32 = vld [vmem:[#allocation10] sm:$0xff]  ;;  %v194_v33 = vperm.slane %v95_v22, 1  ;;  %v274_v39 = vperm.slane %v95_v22, 2 }
  0x1f   :  { %165 = vmatpush.bf16.msra.mxu0 %v457_v4 }
  0x20   :  { %245 = vmatpush.bf16.msra.mxu1 %v465_v5 }
  0x21   :  { %324 = vmatpush.bf16.msra.mxu2 %v474_v19 }
  0x23   :  { %166 = vmatpush.bf16.msra.mxu0 %v456_v6 }
  0x24   :  { %246 = vmatpush.bf16.msra.mxu1 %v464_v7 }
  0x25   :  { %325 = vmatpush.bf16.msra.mxu2 %v473_v20 }
  0x27   :  { %167 = vmatpush.bf16.msra.mxu0 %v455_v8 }
  0x28   :  { %247 = vmatpush.bf16.msra.mxu1 %v463_v9 }
  0x29   :  { %326 = vmatpush.bf16.msra.mxu2 %v472_v21 }
  0x2b   :  { %168 = vmatpush.bf16.msra.mxu0 %v454_v10 }
  0x2c   :  { %248 = vmatpush.bf16.msra.mxu1 %v462_v15 }
  0x2d   :  { %327 = vmatpush.bf16.msra.mxu2 %v471_v23 }
  0x2f   :  { %169 = vmatpush.bf16.msra.mxu0 %v453_v11 }
  0x30   :  { %249 = vmatpush.bf16.msra.mxu1 %v461_v16 }
  0x31   :  { %328 = vmatpush.bf16.msra.mxu2 %v470_v25 }
  0x33   :  { %170 = vmatpush.bf16.msra.mxu0 %v452_v12 }
  0x34   :  { %250 = vmatpush.bf16.msra.mxu1 %v460_v17 }
  0x35   :  { %329 = vmatpush.bf16.msra.mxu2 %v469_v31 }
  0x36   :  { %171 = vmatmul.bf16.vlgmr.msra.gmra.mxu0 %v97_v14 }
  0x39   :  { %330 = vmatpush.bf16.msra.mxu2 %v468_v32 }
  0xb3   :  { %v172_v26 = vpop.f32.mrf.mxu0 }
  0xb4   :  { %v173_v27 = vadd.f32 %v172_v26, %v114_v24 }
  0xb6   :  { %484 = vtanh.f32 %v173_v27 }
  0xbb   :  { %v174_v28 = vpop.f32.mrf.mxu0 }
  0xbc   :  { %v485_v29 = vpop.eup %484 }
  0xbd   :  { %v177_v30 = vpack.c.bf16 %v485_v29, %v485_v29 }
  0xbf   :  { %251 = vmatmul.bf16.vlgmr.msra.gmra.mxu1 %v177_v30 }
 0x13c   :  { %v252_v34 = vpop.f32.mrf.mxu1 }
 0x13d   :  { %v253_v35 = vadd.f32 %v252_v34, %v194_v33 }
 0x13f   :  { %v256_v36 = vmax.f32 %v253_v35, 0.0 }
 0x141   :  { %v257_v37 = vpack.c.bf16 %v256_v36, %v256_v36 }
 0x143   :  { %331 = vmatmul.bf16.vlgmr.msra.gmra.mxu2 %v257_v37 }
 0x144   :  { %v254_v38 = vpop.f32.mrf.mxu1 }
 0x1c6   :  { %v332_v40 = vpop.f32.mrf.mxu2 }
 0x1c7   :  { %v333_v41 = vadd.f32 %v332_v40, %v274_v39 }
 0x1c9   :  { %336 = vst [vmem:[#allocation11] sm:$0xff] %v333_v41 }
 0x1ca   :  { %347 = dma.vmem_to_hbm [thread:$0]  %s343_s4, 128, %s345_s19, [#allocation4]  }
 0x1ce   :  { %v334_v42 = vpop.f32.mrf.mxu2 }
 0x1cf   :  { %636 = dma.done.wait [#allocation4], 128  }
 0x1d0   :  { %637 = vsyncadd [#allocation4], 4294967168 }
 0x1d1   :  { %352 = vsyncpa [#allocation3], 1 }
 0x1d2   :  { %353 = vsyncpa [#allocation6], 1 }
 0x1d3   :  { %354 = vsyncpa [#allocation9], 1 }
 0x1d4   :  { %355 = vsyncpa [#allocation4], 1 }

</bundles_post_ra>
